<compile_context>
chip_gen: v5e
topology: v5e:2x2
jax: 0.10.0
libtpu: 0.0.40
codegen_flags: <defaults>
</compile_context>

<pallas_src>
import functools

import jax
import jax.numpy as jnp
from jax.experimental import pallas as pl
from jax.experimental.pallas import tpu as pltpu


def _round_up(x, m):
    return ((x + m - 1) // m) * m


def _mlp_block_kernel(x_ref, gamma_ref, beta_ref, w1_ref, b1_ref,
                      w2_ref, b2_ref, o_ref, *, eps, approximate_gelu):
    """Fused LayerNorm + MLP(GELU) + residual for one (TM, D) tile of tokens."""
    # Elementwise math in f32 (VPU/EUP); only the MXU sees the weights' dtype.
    x = x_ref[...].astype(jnp.float32)

    # --- LayerNorm (biased variance, eps inside rsqrt; matches nn.LayerNorm) ---
    mean = jnp.mean(x, axis=-1, keepdims=True)
    centered = x - mean
    var = jnp.mean(centered * centered, axis=-1, keepdims=True)
    xn = centered * jax.lax.rsqrt(var + eps)
    xn = xn * gamma_ref[...].astype(jnp.float32) + beta_ref[...].astype(jnp.float32)

    # --- Linear 1: feed MXU in the weight's native dtype, accumulate in f32 ---
    w1 = w1_ref[...]
    h = jnp.dot(xn.astype(w1.dtype), w1, preferred_element_type=jnp.float32)
    h = h + b1_ref[...].astype(jnp.float32)

    # --- GELU: tanh approximation runs on the EUP slot (nearly free).
    # Set approximate_gelu=False for exact erf (PyTorch nn.GELU default). ---
    h = jax.nn.gelu(h, approximate=approximate_gelu)

    # --- Linear 2 ---
    w2 = w2_ref[...]
    y = jnp.dot(h.astype(w2.dtype), w2, preferred_element_type=jnp.float32)
    y = y + b2_ref[...].astype(jnp.float32)

    # --- residual (f32), single cast on the way out ---
    o_ref[...] = (x + y).astype(o_ref.dtype)


def transformer_block_mlp(inputs, gamma, beta, w1, b1, w2, b2, *,
                          eps=1e-6, tile_m=256, approximate_gelu=True,
                          vmem_limit_bytes=64 * 1024 * 1024):
    """out = inputs + MLP(LayerNorm(inputs)); inputs: (B, S, D)."""
    B, S, D = inputs.shape
    H = w1.shape[1]
    M = B * S

    # Pick the row tile: multiple of 16 rows (safe for bf16 packing), clamped
    # so small problems take a single grid step; pad M up to a tile multiple.
    min_rows = 16
    tm = max(min_rows,
             min(_round_up(tile_m, min_rows), _round_up(M, min_rows)))
    M_pad = _round_up(M, tm)

    x2d = inputs.reshape(M, D)
    if M_pad != M:
        x2d = jnp.pad(x2d, ((0, M_pad - M), (0, 0)))

    gamma2d = gamma.reshape(1, D)
    beta2d = beta.reshape(1, D)
    b1_2d = b1.reshape(1, H)
    b2_2d = b2.reshape(1, D)

    kernel = functools.partial(_mlp_block_kernel, eps=eps,
                               approximate_gelu=approximate_gelu)

    out2d = pl.pallas_call(
        kernel,
        out_shape=jax.ShapeDtypeStruct((M_pad, D), inputs.dtype),
        grid_spec=pltpu.PrefetchScalarGridSpec(
            num_scalar_prefetch=0,
            grid=(M_pad // tm,),
            in_specs=[
                pl.BlockSpec((tm, D), lambda i: (i, 0)),   # x tile
                pl.BlockSpec((1, D), lambda i: (0, 0)),    # gamma
                pl.BlockSpec((1, D), lambda i: (0, 0)),    # beta
                pl.BlockSpec((D, H), lambda i: (0, 0)),    # w1 (resident)
                pl.BlockSpec((1, H), lambda i: (0, 0)),    # b1
                pl.BlockSpec((H, D), lambda i: (0, 0)),    # w2 (resident)
                pl.BlockSpec((1, D), lambda i: (0, 0)),    # b2
            ],
            out_specs=pl.BlockSpec((tm, D), lambda i: (i, 0)),
        ),
        compiler_params=pltpu.CompilerParams(
            dimension_semantics=("parallel",),
            vmem_limit_bytes=vmem_limit_bytes),
    )(x2d, gamma2d, beta2d, w1, b1_2d, w2, b2_2d)

    return out2d[:M].reshape(B, S, D)


def reference(inputs, gamma, beta, w1, b1, w2, b2, *,
              eps=1e-6, approximate_gelu=True):
    """Plain-JAX reference mirroring the kernel's numerics."""
    x = inputs.astype(jnp.float32)
    mean = jnp.mean(x, axis=-1, keepdims=True)
    var = jnp.mean((x - mean) ** 2, axis=-1, keepdims=True)
    xn = (x - mean) * jax.lax.rsqrt(var + eps)
    xn = xn * gamma.astype(jnp.float32) + beta.astype(jnp.float32)
    h = jnp.dot(xn.astype(w1.dtype), w1,
                preferred_element_type=jnp.float32) + b1.astype(jnp.float32)
    h = jax.nn.gelu(h, approximate=approximate_gelu)
    y = jnp.dot(h.astype(w2.dtype), w2,
                preferred_element_type=jnp.float32) + b2.astype(jnp.float32)
    return (x + y).astype(inputs.dtype)


if __name__ == "__main__":
    # Module hyper-params (small but lane-dense: D, H multiples of 128)
    embed_dim, head_dim, num_heads, mlp_size = 128, 32, 4, 256
    B, S = 2, 8

    key = jax.random.PRNGKey(0)
    k_x, k_g, k_b, k_w1, k_b1, k_w2, k_b2 = jax.random.split(key, 7)

    x = jax.random.normal(k_x, (B, S, embed_dim), jnp.float32)
    gamma = 1.0 + 0.05 * jax.random.normal(k_g, (embed_dim,), jnp.float32)
    beta = 0.05 * jax.random.normal(k_b, (embed_dim,), jnp.float32)
    w1 = jax.random.normal(k_w1, (embed_dim, mlp_size), jnp.float32) * 0.05
    b1 = jax.random.normal(k_b1, (mlp_size,), jnp.float32) * 0.05
    w2 = jax.random.normal(k_w2, (mlp_size, embed_dim), jnp.float32) * 0.05
    b2 = jax.random.normal(k_b2, (embed_dim,), jnp.float32) * 0.05

    # --- f32 path -----------------------------------------------------------
    out = jax.block_until_ready(
        transformer_block_mlp(x, gamma, beta, w1, b1, w2, b2))
    ref = reference(x, gamma, beta, w1, b1, w2, b2)
    assert out.shape == (B, S, embed_dim)
    assert jnp.allclose(out, ref, atol=1e-3, rtol=1e-3), "f32 mismatch vs reference"

    # --- bf16 path (production MXU path on v6e/v7x) -------------------------
    xb = x.astype(jnp.bfloat16)
    params_bf = [p.astype(jnp.bfloat16) for p in (gamma, beta, w1, b1, w2, b2)]
    out_bf = jax.block_until_ready(transformer_block_mlp(xb, *params_bf))
    ref_bf = reference(xb, *params_bf)
    assert out_bf.shape == (B, S, embed_dim)
    assert jnp.allclose(out_bf.astype(jnp.float32), ref_bf.astype(jnp.float32),
                        atol=3e-2, rtol=3e-2), "bf16 mismatch vs reference"

    print("KERNEL_OK")
</pallas_src>

<mosaic_0001>
module attributes {stable_mosaic.version = 11 : i64} {
  func.func @_mlp_block_kernel(%arg0: i32, %arg1: memref<16x128xf32, #tpu.memory_space<vmem>>, %arg2: memref<1x128xf32, #tpu.memory_space<vmem>>, %arg3: memref<1x128xf32, #tpu.memory_space<vmem>>, %arg4: memref<128x256xf32, #tpu.memory_space<vmem>>, %arg5: memref<1x256xf32, #tpu.memory_space<vmem>>, %arg6: memref<256x128xf32, #tpu.memory_space<vmem>>, %arg7: memref<1x128xf32, #tpu.memory_space<vmem>>, %arg8: memref<16x128xf32, #tpu.memory_space<vmem>>) attributes {dimension_semantics = [#tpu.dimension_semantics<parallel>], iteration_bounds = array<i64: 1>, scalar_prefetch = 0 : i64, scratch_operands = 0 : i64, tpu.core_type = #tpu.core_type<tc>, window_params = [{transform_indices = @transform_0, window_bounds = array<i64: 16, 128>}, {pipeline_mode = #tpu.pipeline_mode<synchronous>, transform_indices = @transform_1, window_bounds = array<i64: 1, 128>}, {pipeline_mode = #tpu.pipeline_mode<synchronous>, transform_indices = @transform_2, window_bounds = array<i64: 1, 128>}, {pipeline_mode = #tpu.pipeline_mode<synchronous>, transform_indices = @transform_3, window_bounds = array<i64: 128, 256>}, {pipeline_mode = #tpu.pipeline_mode<synchronous>, transform_indices = @transform_4, window_bounds = array<i64: 1, 256>}, {pipeline_mode = #tpu.pipeline_mode<synchronous>, transform_indices = @transform_5, window_bounds = array<i64: 256, 128>}, {pipeline_mode = #tpu.pipeline_mode<synchronous>, transform_indices = @transform_6, window_bounds = array<i64: 1, 128>}, {transform_indices = @transform_7, window_bounds = array<i64: 16, 128>}]} {
    %c0 = arith.constant 0 : index
    %c0_0 = arith.constant 0 : index
    %0 = vector.load %arg1[%c0, %c0_0] : memref<16x128xf32, #tpu.memory_space<vmem>>, vector<16x128xf32>
    %cst = arith.constant dense<0.000000e+00> : vector<16xf32>
    %1 = vector.multi_reduction <add>, %0, %cst [1] : vector<16x128xf32> to vector<16xf32>
    %2 = vector.shape_cast %1 : vector<16xf32> to vector<16x1xf32>
    %cst_1 = arith.constant 1.280000e+02 : f32
    %3 = vector.broadcast %cst_1 : f32 to vector<16x1xf32>
    %4 = arith.divf %2, %3 : vector<16x1xf32>
    %5 = vector.broadcast %4 : vector<16x1xf32> to vector<16x128xf32>
    %6 = arith.subf %0, %5 : vector<16x128xf32>
    %7 = arith.mulf %6, %6 : vector<16x128xf32>
    %cst_2 = arith.constant dense<0.000000e+00> : vector<16xf32>
    %8 = vector.multi_reduction <add>, %7, %cst_2 [1] : vector<16x128xf32> to vector<16xf32>
    %9 = vector.shape_cast %8 : vector<16xf32> to vector<16x1xf32>
    %cst_3 = arith.constant 1.280000e+02 : f32
    %10 = vector.broadcast %cst_3 : f32 to vector<16x1xf32>
    %11 = arith.divf %9, %10 : vector<16x1xf32>
    %cst_4 = arith.constant 9.99999997E-7 : f32
    %12 = vector.broadcast %cst_4 : f32 to vector<16x1xf32>
    %13 = arith.addf %11, %12 : vector<16x1xf32>
    %14 = math.rsqrt %13 : vector<16x1xf32>
    %15 = vector.broadcast %14 : vector<16x1xf32> to vector<16x128xf32>
    %16 = arith.mulf %6, %15 : vector<16x128xf32>
    %c0_5 = arith.constant 0 : index
    %c0_6 = arith.constant 0 : index
    %17 = vector.load %arg2[%c0_5, %c0_6] : memref<1x128xf32, #tpu.memory_space<vmem>>, vector<1x128xf32>
    %18 = vector.broadcast %17 : vector<1x128xf32> to vector<16x128xf32>
    %19 = arith.mulf %16, %18 : vector<16x128xf32>
    %c0_7 = arith.constant 0 : index
    %c0_8 = arith.constant 0 : index
    %20 = vector.load %arg3[%c0_7, %c0_8] : memref<1x128xf32, #tpu.memory_space<vmem>>, vector<1x128xf32>
    %21 = vector.broadcast %20 : vector<1x128xf32> to vector<16x128xf32>
    %22 = arith.addf %19, %21 : vector<16x128xf32>
    %c0_9 = arith.constant 0 : index
    %c0_10 = arith.constant 0 : index
    %23 = vector.load %arg4[%c0_9, %c0_10] : memref<128x256xf32, #tpu.memory_space<vmem>>, vector<128x256xf32>
    %cst_11 = arith.constant dense<0.000000e+00> : vector<16x256xf32>
    %24 = tpu.matmul %22, %23, %cst_11 {dimension_numbers = #tpu.dot_dimension_numbers<[1], [0], [0], [1], [0, 0, 1, 1], [], []>} : vector<16x128xf32>, vector<128x256xf32>, vector<16x256xf32> -> vector<16x256xf32>
    %c0_12 = arith.constant 0 : index
    %c0_13 = arith.constant 0 : index
    %25 = vector.load %arg5[%c0_12, %c0_13] : memref<1x256xf32, #tpu.memory_space<vmem>>, vector<1x256xf32>
    %26 = vector.broadcast %25 : vector<1x256xf32> to vector<16x256xf32>
    %27 = arith.addf %24, %26 : vector<16x256xf32>
    %28 = arith.mulf %27, %27 : vector<16x256xf32>
    %29 = arith.mulf %27, %28 : vector<16x256xf32>
    %cst_14 = arith.constant 4.471500e-02 : f32
    %30 = vector.broadcast %cst_14 : f32 to vector<16x256xf32>
    %31 = arith.mulf %30, %29 : vector<16x256xf32>
    %32 = arith.addf %27, %31 : vector<16x256xf32>
    %cst_15 = arith.constant 0.797884583 : f32
    %33 = vector.broadcast %cst_15 : f32 to vector<16x256xf32>
    %34 = arith.mulf %33, %32 : vector<16x256xf32>
    %35 = math.tanh %34 : vector<16x256xf32>
    %cst_16 = arith.constant 1.000000e+00 : f32
    %36 = vector.broadcast %cst_16 : f32 to vector<16x256xf32>
    %37 = arith.addf %36, %35 : vector<16x256xf32>
    %cst_17 = arith.constant 5.000000e-01 : f32
    %38 = vector.broadcast %cst_17 : f32 to vector<16x256xf32>
    %39 = arith.mulf %38, %37 : vector<16x256xf32>
    %40 = arith.mulf %27, %39 : vector<16x256xf32>
    %c0_18 = arith.constant 0 : index
    %c0_19 = arith.constant 0 : index
    %41 = vector.load %arg6[%c0_18, %c0_19] : memref<256x128xf32, #tpu.memory_space<vmem>>, vector<256x128xf32>
    %cst_20 = arith.constant dense<0.000000e+00> : vector<16x128xf32>
    %42 = tpu.matmul %40, %41, %cst_20 {dimension_numbers = #tpu.dot_dimension_numbers<[1], [0], [0], [1], [0, 0, 1, 1], [], []>} : vector<16x256xf32>, vector<256x128xf32>, vector<16x128xf32> -> vector<16x128xf32>
    %c0_21 = arith.constant 0 : index
    %c0_22 = arith.constant 0 : index
    %43 = vector.load %arg7[%c0_21, %c0_22] : memref<1x128xf32, #tpu.memory_space<vmem>>, vector<1x128xf32>
    %44 = vector.broadcast %43 : vector<1x128xf32> to vector<16x128xf32>
    %45 = arith.addf %42, %44 : vector<16x128xf32>
    %46 = arith.addf %0, %45 : vector<16x128xf32>
    %c0_23 = arith.constant 0 : index
    %c0_24 = arith.constant 0 : index
    %47 = vector.load %arg8[%c0_23, %c0_24] : memref<16x128xf32, #tpu.memory_space<vmem>>, vector<16x128xf32>
    tpu.vector_store %arg8[%c0_23, %c0_24], %46 {strides = array<i32>} : memref<16x128xf32, #tpu.memory_space<vmem>>, vector<16x128xf32>,
    return
  }
  func.func @transform_0(%arg0: i32) -> (i32, i32) {
    %c0_i32 = arith.constant 0 : i32
    %c0_i32_0 = arith.constant 0 : i32
    return %arg0, %c0_i32 : i32, i32
  }
  func.func @transform_1(%arg0: i32) -> (i32, i32) {
    %c0_i32 = arith.constant 0 : i32
    %c0_i32_0 = arith.constant 0 : i32
    %c0_i32_1 = arith.constant 0 : i32
    return %c0_i32, %c0_i32_0 : i32, i32
  }
  func.func @transform_2(%arg0: i32) -> (i32, i32) {
    %c0_i32 = arith.constant 0 : i32
    %c0_i32_0 = arith.constant 0 : i32
    %c0_i32_1 = arith.constant 0 : i32
    return %c0_i32, %c0_i32_0 : i32, i32
  }
  func.func @transform_3(%arg0: i32) -> (i32, i32) {
    %c0_i32 = arith.constant 0 : i32
    %c0_i32_0 = arith.constant 0 : i32
    %c0_i32_1 = arith.constant 0 : i32
    return %c0_i32, %c0_i32_0 : i32, i32
  }
  func.func @transform_4(%arg0: i32) -> (i32, i32) {
    %c0_i32 = arith.constant 0 : i32
    %c0_i32_0 = arith.constant 0 : i32
    %c0_i32_1 = arith.constant 0 : i32
    return %c0_i32, %c0_i32_0 : i32, i32
  }
  func.func @transform_5(%arg0: i32) -> (i32, i32) {
    %c0_i32 = arith.constant 0 : i32
    %c0_i32_0 = arith.constant 0 : i32
    %c0_i32_1 = arith.constant 0 : i32
    return %c0_i32, %c0_i32_0 : i32, i32
  }
  func.func @transform_6(%arg0: i32) -> (i32, i32) {
    %c0_i32 = arith.constant 0 : i32
    %c0_i32_0 = arith.constant 0 : i32
    %c0_i32_1 = arith.constant 0 : i32
    return %c0_i32, %c0_i32_0 : i32, i32
  }
  func.func @transform_7(%arg0: i32) -> (i32, i32) {
    %c0_i32 = arith.constant 0 : i32
    %c0_i32_0 = arith.constant 0 : i32
    return %arg0, %c0_i32 : i32, i32
  }
}

</mosaic_0001>

<bundles_post_ra>
// kernel: tpu_custom_call.1
= control target key start
LH: loop header
LB: loop body
LE: loop exit
PB: predicated region body
PF: predicated region fallthrough
CT: control target
= control target key end

     0   :  { %12 = vsyncpa [#allocation3], 0  ;;  %s640_s0 = inlined_call_operand.hbm [shape: f32[16,128], index: 0, kind: input, shape index: {}]   ;;  %s641_s1 = inlined_call_operand.hbm [shape: f32[1,128], index: 1, kind: input, shape index: {}]   ;;  %s642_s2 = inlined_call_operand.vmem [shape: f32[1,128], index: 2, kind: input, shape index: {}]   ;;  %s643_s3 = inlined_call_operand.hbm [shape: f32[128,256], index: 3, kind: input, shape index: {}]   ;;  %s644_s4 = inlined_call_operand.vmem [shape: f32[1,256], index: 4, kind: input, shape index: {}]   ;;  %s645_s5 = inlined_call_operand.hbm [shape: f32[256,128], index: 5, kind: input, shape index: {}]   ;;  %s646_s6 = inlined_call_operand.vmem [shape: f32[1,128], index: 6, kind: input, shape index: {}]   ;;  %s647_s7 = inlined_call_operand.hbm [shape: f32[16,128], index: 7, kind: output, shape index: {}]  }
   0x1   :  { %13 = vsyncpa [#allocation6], 0 }
   0x2   :  { %14 = vsyncpa [#allocation9], 0  ;;  %s34_s26 = sshll.u32 %s641_s1, 4  ;;  %s35_s26 = int_to_ptr.hbm [resolvable:$true] %s34_s26 }
   0x3   :  { %15 = vsyncpa [#allocation4], 0  ;;  %s531_s27 = smov [#allocation5]   ;;  %s20_s8 = sshll.u32 %s640_s0, 4  ;;  %s21_s8 = int_to_ptr.hbm [resolvable:$true] %s20_s8 }
   0x4   :  { %s36_s28 = sshll.u32 %s531_s27, 4  ;;  %s532_s9 = smov [#allocation2]   ;;  %s37_s28 = int_to_ptr.vmem [resolvable:$true] %s36_s28 }
   0x5   :  { %39 = dma.hbm_to_vmem [thread:$0]  %s35_s26, 16, %s37_s28, [#allocation6]  }
   0x6   :  { %s22_s10 = sshll.u32 %s532_s9, 4  ;;  %s533_s11 = smov 128   ;;  %s23_s10 = int_to_ptr.vmem [resolvable:$true] %s22_s10 }
   0x7   :  { %s534_s12 = smov 8   ;;  %s46_s14 = sshll.u32 %s643_s3, 4  ;;  %s47_s14 = int_to_ptr.hbm [resolvable:$true] %s46_s14 }
   0x8   :  { %28 = dma.hbm_to_vmem [thread:$0]  %s21_s8, 256, %s23_s10, [#allocation3], %s533_s11, %s533_s11, %s534_s12  }
   0x9   :  { %s535_s15 = smov [#allocation7]   ;;  %s61_s18 = sshll.u32 %s645_s5, 4  ;;  %s62_s18 = int_to_ptr.hbm [resolvable:$true] %s61_s18 }
   0xa   :  { %s48_s16 = sshll.u32 %s535_s15, 4  ;;  %s536_s19 = smov 256   ;;  %s49_s16 = int_to_ptr.vmem [resolvable:$true] %s48_s16 }
   0xb   :  { %s537_s20 = smov 16   ;;  %s538_s21 = smov [#allocation8]  }
   0xc   :  { %54 = dma.hbm_to_vmem [thread:$0]  %s47_s14, 4096, %s49_s16, [#allocation6], %s536_s19, %s536_s19, %s537_s20  }
   0xd   :  { %s63_s22 = sshll.u32 %s538_s21, 4  ;;  %s64_s22 = int_to_ptr.vmem [resolvable:$true] %s63_s22 }
   0xe   :  { %69 = dma.hbm_to_vmem [thread:$0]  %s62_s18, 4096, %s64_s22, [#allocation9], %s533_s11, %s533_s11, %s534_s12  }
   0xf   :  { %523 = dma.done.wait [#allocation3], 256  }
  0x10   :  { %524 = vsyncadd [#allocation3], 4294967040 }
  0x11   :  { %525 = dma.done.wait [#allocation6], 4112  }
  0x12   :  { %526 = vsyncadd [#allocation6], 4294963184 }
  0x13   :  { %527 = dma.done.wait [#allocation9], 4096  }
  0x14   :  { %528 = vsyncadd [#allocation9], 4294963200  ;;  %v599_v0 = vld [vmem:[#allocation2] sm:$0xff]  ;;  %v602_v1 = vld [vmem:[#allocation2 + $0x8] sm:$0xff]  ;;  %v539_v2 = vmov 128.0   ;;  %s540_s25 = smov [#allocation10]  }
  0x15   :  { %90 = vadd.xlane.f32.xlu0 %v599_v0  ;;  %389 = vrcp.f32 %v539_v2  ;;  %v179_v5 = vld [vmem:[#allocation7 + $0xf0] sm:$0xff]  ;;  %v180_v6 = vld [vmem:[#allocation7 + $0xf8] sm:$0xff]  ;;  %v177_v7 = vld [vmem:[#allocation7 + $0xe0] sm:$0xff]  ;;  %s359_s26 = sshll.u32 %s540_s25, 4  ;;  %s361_s29 = sshll.u32 %s647_s7, 4  ;;  %s360_s26 = int_to_ptr.vmem [resolvable:$true] %s359_s26  ;;  %s362_s29 = int_to_ptr.hbm [resolvable:$true] %s361_s29 }
  0x16   :  { %187 = vmatpush.msra.mxu0 %v179_v5  ;;  %210 = vmatpush.msra.mxu1 %v180_v6  ;;  %v178_v8 = vld [vmem:[#allocation7 + $0xe8] sm:$0xff]  ;;  %v175_v21 = vld [vmem:[#allocation7 + $0xd0] sm:$0xff]  ;;  %v176_v22 = vld [vmem:[#allocation7 + $0xd8] sm:$0xff] }
  0x17   :  { %v173_v23 = vld [vmem:[#allocation7 + $0xc0] sm:$0xff]  ;;  %v174_v24 = vld [vmem:[#allocation7 + $0xc8] sm:$0xff]  ;;  %v171_v25 = vld [vmem:[#allocation7 + $0xb0] sm:$0xff] }
  0x18   :  { %188 = vmatpush.msra.mxu0 %v177_v7  ;;  %211 = vmatpush.msra.mxu1 %v178_v8  ;;  %v172_v26 = vld [vmem:[#allocation7 + $0xb8] sm:$0xff]  ;;  %v169_v27 = vld [vmem:[#allocation7 + $0xa0] sm:$0xff]  ;;  %v170_v28 = vld [vmem:[#allocation7 + $0xa8] sm:$0xff] }
  0x19   :  { %v167_v29 = vld [vmem:[#allocation7 + $0x90] sm:$0xff]  ;;  %v168_v30 = vld [vmem:[#allocation7 + $0x98] sm:$0xff]  ;;  %v165_v31 = vld [vmem:[#allocation7 + $0x80] sm:$0xff] }
  0x1a   :  { %189 = vmatpush.msra.mxu0 %v175_v21  ;;  %212 = vmatpush.msra.mxu1 %v176_v22  ;;  %v166_v32 = vld [vmem:[#allocation7 + $0x88] sm:$0xff]  ;;  %v163_v33 = vld [vmem:[#allocation7 + $0x70] sm:$0xff]  ;;  %v164_v34 = vld [vmem:[#allocation7 + $0x78] sm:$0xff] }
  0x1b   :  { %v390_v3 = vpop.eup %389  ;;  %v161_v35 = vld [vmem:[#allocation7 + $0x60] sm:$0xff]  ;;  %v162_v36 = vld [vmem:[#allocation7 + $0x68] sm:$0xff]  ;;  %v159_v37 = vld [vmem:[#allocation7 + $0x50] sm:$0xff] }
  0x1c   :  { %v95_v4 = vmul.f32 128.0, %v390_v3  ;;  %vm99_vm0 = vweird.f32 %v390_v3  ;;  %190 = vmatpush.msra.mxu0 %v173_v23  ;;  %213 = vmatpush.msra.mxu1 %v174_v24  ;;  %v160_v38 = vld [vmem:[#allocation7 + $0x58] sm:$0xff]  ;;  %v157_v39 = vld [vmem:[#allocation7 + $0x40] sm:$0xff]  ;;  %v158_v40 = vld [vmem:[#allocation7 + $0x48] sm:$0xff] }
  0x1d   :  { %92 = vadd.xlane.f32.xlu0 %v602_v1  ;;  %v155_v41 = vld [vmem:[#allocation7 + $0x30] sm:$0xff]  ;;  %v156_v42 = vld [vmem:[#allocation7 + $0x38] sm:$0xff]  ;;  %v153_v43 = vld [vmem:[#allocation7 + $0x20] sm:$0xff] }
  0x1e   :  { %v96_v9 = vsub.f32 1.0, %v95_v4  ;;  %191 = vmatpush.msra.mxu0 %v171_v25  ;;  %214 = vmatpush.msra.mxu1 %v172_v26  ;;  %v154_v44 = vld [vmem:[#allocation7 + $0x28] sm:$0xff]  ;;  %v151_v45 = vld [vmem:[#allocation7 + $0x10] sm:$0xff]  ;;  %v152_v46 = vld [vmem:[#allocation7 + $0x18] sm:$0xff] }
  0x1f   :  { %v149_v47 = vld [vmem:[#allocation7] sm:$0xff]  ;;  %v150_v48 = vld [vmem:[#allocation7 + $0x8] sm:$0xff]  ;;  %v284_v52 = vld [vmem:[#allocation8 + $0x78] sm:$0xff] }
  0x20   :  { %v97_v10 = vmul.f32 %v390_v3, %v96_v9  ;;  %192 = vmatpush.msra.mxu0 %v169_v27  ;;  %215 = vmatpush.msra.mxu1 %v170_v28  ;;  %v300_v53 = vld [vmem:[#allocation8 + $0xf8] sm:$0xff]  ;;  %v283_v54 = vld [vmem:[#allocation8 + $0x70] sm:$0xff]  ;;  %v282_v56 = vld [vmem:[#allocation8 + $0x68] sm:$0xff] }
  0x21   :  { %305 = vmatpush.msra.mxu2 %v284_v52  ;;  %328 = vmatpush.msra.mxu3 %v300_v53  ;;  %v299_v55 = vld [vmem:[#allocation8 + $0xf0] sm:$0xff]  ;;  %v298_v57 = vld [vmem:[#allocation8 + $0xe8] sm:$0xff]  ;;  %v386_v7 = vld [vmem:[#allocation5] ss:$0 sm:$0xff] }
  0x22   :  { %v98_v11 = vadd.f32 %v390_v3, %v97_v10  ;;  %193 = vmatpush.msra.mxu0 %v167_v29  ;;  %216 = vmatpush.msra.mxu1 %v168_v30  ;;  %v297_v23 = vld [vmem:[#allocation8 + $0xe0] sm:$0xff]  ;;  %v280_v24 = vld [vmem:[#allocation8 + $0x58] sm:$0xff]  ;;  %v279_v26 = vld [vmem:[#allocation8 + $0x50] sm:$0xff] }
  0x23   :  { %306 = vmatpush.msra.mxu2 %v283_v54  ;;  %329 = vmatpush.msra.mxu3 %v299_v55  ;;  %v296_v25 = vld [vmem:[#allocation8 + $0xd8] sm:$0xff]  ;;  %v295_v27 = vld [vmem:[#allocation8 + $0xd0] sm:$0xff]  ;;  %v278_v28 = vld [vmem:[#allocation8 + $0x48] sm:$0xff] }
  0x24   :  { %v605_v12 = vsel %vm99_vm0, %v390_v3, %v98_v11  ;;  %194 = vmatpush.msra.mxu0 %v165_v31  ;;  %217 = vmatpush.msra.mxu1 %v166_v32  ;;  %v387_v11 = vld [vmem:[%s642_s2] ss:$0 sm:$0xff]  ;;  %v293_v30 = vld [vmem:[#allocation8 + $0xc0] sm:$0xff]  ;;  %v276_v31 = vld [vmem:[#allocation8 + $0x38] sm:$0xff] }
  0x25   :  { %307 = vmatpush.msra.mxu2 %v282_v56  ;;  %330 = vmatpush.msra.mxu3 %v298_v57  ;;  %v294_v29 = vld [vmem:[#allocation8 + $0xc8] sm:$0xff]  ;;  %v292_v32 = vld [vmem:[#allocation8 + $0xb8] sm:$0xff] }
  0x26   :  { %195 = vmatpush.msra.mxu0 %v163_v33  ;;  %218 = vmatpush.msra.mxu1 %v164_v34  ;;  %v275_v33 = vld [vmem:[#allocation8 + $0x30] sm:$0xff] }
  0x27   :  { %331 = vmatpush.msra.mxu3 %v297_v23  ;;  %v291_v34 = vld [vmem:[#allocation8 + $0xb0] sm:$0xff] }
  0x28   :  { %196 = vmatpush.msra.mxu0 %v161_v35  ;;  %219 = vmatpush.msra.mxu1 %v162_v36  ;;  %v274_v35 = vld [vmem:[#allocation8 + $0x28] sm:$0xff] }
  0x29   :  { %332 = vmatpush.msra.mxu3 %v296_v25  ;;  %v290_v36 = vld [vmem:[#allocation8 + $0xa8] sm:$0xff] }
  0x2a   :  { %197 = vmatpush.msra.mxu0 %v159_v37  ;;  %220 = vmatpush.msra.mxu1 %v160_v38  ;;  %v273_v37 = vld [vmem:[#allocation8 + $0x20] sm:$0xff] }
  0x2b   :  { %333 = vmatpush.msra.mxu3 %v295_v27  ;;  %v289_v38 = vld [vmem:[#allocation8 + $0xa0] sm:$0xff] }
  0x2c   :  { %198 = vmatpush.msra.mxu0 %v157_v39  ;;  %221 = vmatpush.msra.mxu1 %v158_v40  ;;  %v272_v39 = vld [vmem:[#allocation8 + $0x18] sm:$0xff] }
  0x2d   :  { %334 = vmatpush.msra.mxu3 %v294_v29  ;;  %v288_v40 = vld [vmem:[#allocation8 + $0x98] sm:$0xff] }
  0x2e   :  { %199 = vmatpush.msra.mxu0 %v155_v41  ;;  %222 = vmatpush.msra.mxu1 %v156_v42  ;;  %v271_v41 = vld [vmem:[#allocation8 + $0x10] sm:$0xff] }
  0x2f   :  { %335 = vmatpush.msra.mxu3 %v293_v30  ;;  %v287_v42 = vld [vmem:[#allocation8 + $0x90] sm:$0xff] }
  0x30   :  { %200 = vmatpush.msra.mxu0 %v153_v43  ;;  %223 = vmatpush.msra.mxu1 %v154_v44  ;;  %v270_v43 = vld [vmem:[#allocation8 + $0x8] sm:$0xff] }
  0x31   :  { %336 = vmatpush.msra.mxu3 %v292_v32  ;;  %v286_v44 = vld [vmem:[#allocation8 + $0x88] sm:$0xff] }
  0x32   :  { %201 = vmatpush.msra.mxu0 %v151_v45  ;;  %224 = vmatpush.msra.mxu1 %v152_v46  ;;  %v269_v45 = vld [vmem:[#allocation8] sm:$0xff]  ;;  %v388_v32 = vld [vmem:[%s646_s6] ss:$0 sm:$0xff] }
  0x33   :  { %337 = vmatpush.msra.mxu3 %v291_v34  ;;  %v285_v46 = vld [vmem:[#allocation8 + $0x80] sm:$0xff] }
  0x34   :  { %202 = vmatpush.msra.mxu0 %v149_v47  ;;  %225 = vmatpush.msra.mxu1 %v150_v48  ;;  %v181_v47 = vld [vmem:[%s644_s4] sm:$0x3] }
  0x35   :  { %338 = vmatpush.msra.mxu3 %v290_v36  ;;  %v183_v48 = vperm.slane %v181_v47, 0 }
  0x37   :  { %339 = vmatpush.msra.mxu3 %v289_v38 }
  0x39   :  { %340 = vmatpush.msra.mxu3 %v288_v40 }
  0x3b   :  { %341 = vmatpush.msra.mxu3 %v287_v42 }
  0x3d   :  { %342 = vmatpush.msra.mxu3 %v286_v44 }
  0x3f   :  { %343 = vmatpush.msra.mxu3 %v285_v46 }
  0x88   :  { %v91_v13 = vpop.xlane.xlu0 %90 }
  0x89   :  { %v101_v14 = vmul.f32 %v605_v12, %v91_v13 }
  0x8b   :  { %v609_v15 = vsub.f32 %v599_v0, %v101_v14 }
  0x8d   :  { %v105_v16 = vmul.f32 %v609_v15, %v609_v15 }
  0x8f   :  { %107 = vadd.xlane.f32.xlu1 %v105_v16 }
  0x90   :  { %v93_v17 = vpop.xlane.xlu0 %92 }
  0x91   :  { %v102_v18 = vmul.f32 %v605_v12, %v93_v17 }
  0x93   :  { %v615_v19 = vsub.f32 %v602_v1, %v102_v18 }
  0x95   :  { %v106_v20 = vmul.f32 %v615_v19, %v615_v19 }
  0x97   :  { %109 = vadd.xlane.f32.xlu1 %v106_v20 }
 0x102   :  { %v108_v49 = vpop.xlane.xlu1 %107 }
 0x103   :  { %v111_v50 = vmul.f32 %v108_v49, %v605_v12  ;;  %v184_v49 = vperm.slane %v181_v47, 1 }
 0x105   :  { %v113_v51 = vadd.f32 1e-06, %v111_v50 }
 0x107   :  { %391 = vrsqrt.f32 %v113_v51  ;;  %vm121_vm2 = vweird.f32 %v113_v51 }
 0x10a   :  { %v110_v58 = vpop.xlane.xlu1 %109 }
 0x10b   :  { %v112_v59 = vmul.f32 %v110_v58, %v605_v12 }
 0x10d   :  { %v392_v60 = vpop.eup %391  ;;  %v114_v61 = vadd.f32 1e-06, %v112_v59 }
 0x10e   :  { %v116_v62 = vmul.f32 %v392_v60, %v113_v51  ;;  %vm122_vm1 = vweird.f32 %v392_v60 }
 0x10f   :  { %393 = vrsqrt.f32 %v114_v61  ;;  %vm123_vm3 = vmor %vm121_vm2, %vm122_vm1  ;;  %vm131_vm5 = vweird.f32 %v114_v61 }
 0x110   :  { %v117_v63 = vmul.f32 %v392_v60, %v116_v62 }
 0x112   :  { %v118_v2 = vmul.f32 0.5, %v117_v63 }
 0x114   :  { %v119_v3 = vsub.f32 1.5, %v118_v2 }
 0x115   :  { %v394_v4 = vpop.eup %393 }
 0x116   :  { %v120_v5 = vmul.f32 %v392_v60, %v119_v3  ;;  %v126_v6 = vmul.f32 %v394_v4, %v114_v61  ;;  %vm132_vm4 = vweird.f32 %v394_v4 }
 0x117   :  { %vm133_vm6 = vmor %vm131_vm5, %vm132_vm4 }
 0x118   :  { %v127_v8 = vmul.f32 %v394_v4, %v126_v6  ;;  %v124_v9 = vsel %vm123_vm3, %v392_v60, %v120_v5 }
 0x119   :  { %v135_v10 = vmul.f32 %v124_v9, %v609_v15  ;;  %v281_v15 = vld [vmem:[#allocation8 + $0x60] sm:$0xff] }
 0x11a   :  { %v128_v12 = vmul.f32 0.5, %v127_v8  ;;  %308 = vmatpush.msra.mxu2 %v281_v15 }
 0x11b   :  { %v141_v13 = vmul.f32 %v386_v7, %v135_v10 }
 0x11c   :  { %v129_v14 = vsub.f32 1.5, %v128_v12  ;;  %309 = vmatpush.msra.mxu2 %v280_v24 }
 0x11d   :  { %v147_v16 = vadd.f32 %v387_v11, %v141_v13 }
 0x11e   :  { %v130_v17 = vmul.f32 %v394_v4, %v129_v14  ;;  %310 = vmatpush.msra.mxu2 %v279_v26 }
 0x11f   :  { %203 = vmatmul.f32.vlgmr.msra.gmra.mxu0 %v147_v16  ;;  %226 = vmatmul.f32.vlgmr.msra.gmra.mxu1 %v147_v16 }
 0x120   :  { %v134_v18 = vsel %vm133_vm6, %v394_v4, %v130_v17  ;;  %311 = vmatpush.msra.mxu2 %v278_v28 }
 0x121   :  { %v136_v20 = vmul.f32 %v134_v18, %v615_v19  ;;  %v277_v19 = vld [vmem:[#allocation8 + $0x40] sm:$0xff] }
 0x122   :  { %312 = vmatpush.msra.mxu2 %v277_v19 }
 0x123   :  { %v142_v21 = vmul.f32 %v386_v7, %v136_v20 }
 0x124   :  { %313 = vmatpush.msra.mxu2 %v276_v31 }
 0x125   :  { %v148_v22 = vadd.f32 %v387_v11, %v142_v21 }
 0x126   :  { %314 = vmatpush.msra.mxu2 %v275_v33 }
 0x127   :  { %206 = vmatmul.f32.gmra.mxu0 %v148_v22  ;;  %229 = vmatmul.f32.gmra.mxu1 %v148_v22 }
 0x128   :  { %315 = vmatpush.msra.mxu2 %v274_v35 }
 0x12a   :  { %316 = vmatpush.msra.mxu2 %v273_v37 }
 0x12c   :  { %317 = vmatpush.msra.mxu2 %v272_v39 }
 0x12e   :  { %318 = vmatpush.msra.mxu2 %v271_v41 }
 0x130   :  { %319 = vmatpush.msra.mxu2 %v270_v43 }
 0x132   :  { %320 = vmatpush.msra.mxu2 %v269_v45 }
 0x19c   :  { %v204_v50 = vpop.f32.mrf.mxu0  ;;  %v227_v51 = vpop.f32.mrf.mxu1 }
 0x19d   :  { %v205_v52 = vadd.f32 %v204_v50, %v183_v48  ;;  %v228_v53 = vadd.f32 %v227_v51, %v184_v49 }
 0x19f   :  { %v233_v54 = vmul.f32 %v205_v52, %v205_v52  ;;  %v234_v55 = vmul.f32 %v228_v53, %v228_v53 }
 0x1a1   :  { %v237_v56 = vmul.f32 %v233_v54, %v205_v52  ;;  %v238_v57 = vmul.f32 %v234_v55, %v228_v53 }
 0x1a3   :  { %v241_v58 = vmul.f32 0.044715, %v237_v56  ;;  %v242_v59 = vmul.f32 0.044715, %v238_v57 }
 0x1a4   :  { %v207_v60 = vpop.f32.mrf.mxu0  ;;  %v230_v61 = vpop.f32.mrf.mxu1 }
 0x1a5   :  { %v208_v62 = vadd.f32 %v207_v60, %v183_v48  ;;  %v231_v63 = vadd.f32 %v230_v61, %v184_v49  ;;  %v245_v2 = vadd.f32 %v241_v58, %v205_v52  ;;  %v246_v3 = vadd.f32 %v242_v59, %v228_v53 }
 0x1a7   :  { %v235_v4 = vmul.f32 %v208_v62, %v208_v62  ;;  %v236_v5 = vmul.f32 %v231_v63, %v231_v63  ;;  %v249_v6 = vmul.f32 0.7978846, %v245_v2  ;;  %v250_v7 = vmul.f32 0.7978846, %v246_v3 }
 0x1a9   :  { %v239_v8 = vmul.f32 %v235_v4, %v208_v62  ;;  %v240_v9 = vmul.f32 %v236_v5, %v231_v63  ;;  %395 = vtanh.f32 %v249_v6 }
 0x1aa   :  { %397 = vtanh.f32 %v250_v7 }
 0x1ab   :  { %v243_v10 = vmul.f32 0.044715, %v239_v8  ;;  %v244_v11 = vmul.f32 0.044715, %v240_v9 }
 0x1ad   :  { %v247_v12 = vadd.f32 %v243_v10, %v208_v62  ;;  %v248_v13 = vadd.f32 %v244_v11, %v231_v63 }
 0x1af   :  { %v396_v14 = vpop.eup %395  ;;  %v251_v16 = vmul.f32 0.7978846, %v247_v12  ;;  %v252_v17 = vmul.f32 0.7978846, %v248_v13 }
 0x1b0   :  { %v398_v18 = vpop.eup %397  ;;  %v257_v20 = vadd.f32 1.0, %v396_v14 }
 0x1b1   :  { %v258_v21 = vadd.f32 1.0, %v398_v18  ;;  %399 = vtanh.f32 %v251_v16 }
 0x1b2   :  { %v261_v22 = vmul.f32 0.5, %v257_v20  ;;  %401 = vtanh.f32 %v252_v17 }
 0x1b3   :  { %v262_v15 = vmul.f32 0.5, %v258_v21 }
 0x1b4   :  { %v265_v23 = vmul.f32 %v261_v22, %v205_v52 }
 0x1b5   :  { %v266_v24 = vmul.f32 %v262_v15, %v228_v53 }
 0x1b6   :  { %321 = vmatmul.f32.vlgmr.msra.gmra.mxu2 %v265_v23 }
 0x1b7   :  { %v400_v25 = vpop.eup %399  ;;  %344 = vmatmul.f32.vlgmr.msra.gmra.mxu3 %v266_v24 }
 0x1b8   :  { %v402_v26 = vpop.eup %401  ;;  %v259_v27 = vadd.f32 1.0, %v400_v25 }
 0x1b9   :  { %v260_v28 = vadd.f32 1.0, %v402_v26 }
 0x1ba   :  { %v263_v29 = vmul.f32 0.5, %v259_v27 }
 0x1bb   :  { %v264_v19 = vmul.f32 0.5, %v260_v28 }
 0x1bc   :  { %v267_v30 = vmul.f32 %v263_v29, %v208_v62 }
 0x1bd   :  { %v268_v31 = vmul.f32 %v264_v19, %v231_v63 }
 0x1be   :  { %324 = vmatmul.f32.gmra.mxu2 %v267_v30 }
 0x1bf   :  { %347 = vmatmul.f32.gmra.mxu3 %v268_v31 }
 0x239   :  { %v322_v33 = vpop.f32.mrf.mxu2 }
 0x23a   :  { %v323_v34 = vadd.f32 %v388_v32, %v322_v33  ;;  %v345_v35 = vpop.f32.mrf.mxu3 }
 0x23c   :  { %v346_v36 = vadd.f32 %v345_v35, %v323_v34 }
 0x23e   :  { %v351_v37 = vadd.f32 %v346_v36, %v599_v0 }
 0x240   :  { %353 = vst [vmem:[#allocation10] sm:$0xff] %v351_v37 }
 0x241   :  { %v325_v38 = vpop.f32.mrf.mxu2 }
 0x242   :  { %v326_v39 = vadd.f32 %v388_v32, %v325_v38  ;;  %v348_v40 = vpop.f32.mrf.mxu3 }
 0x244   :  { %v349_v41 = vadd.f32 %v348_v40, %v326_v39 }
 0x246   :  { %v352_v42 = vadd.f32 %v349_v41, %v602_v1 }
 0x248   :  { %354 = vst [vmem:[#allocation10 + $0x8] sm:$0xff] %v352_v42 }
 0x249   :  { %367 = dma.vmem_to_hbm [thread:$0]  %s360_s26, 256, %s362_s29, [#allocation4], %s533_s11, %s533_s11, %s534_s12  }
 0x24a   :  { %529 = dma.done.wait [#allocation4], 256  }
 0x24b   :  { %530 = vsyncadd [#allocation4], 4294967040 }
 0x24c   :  { %372 = vsyncpa [#allocation3], 1 }
 0x24d   :  { %373 = vsyncpa [#allocation6], 1 }
 0x24e   :  { %374 = vsyncpa [#allocation9], 1 }
 0x24f   :  { %375 = vsyncpa [#allocation4], 1 }

</bundles_post_ra>
